<compile_context>
chip_gen: v6e
topology: v6e:2x2x1
jax: 0.10.0
libtpu: 0.0.40
codegen_flags: <defaults>
</compile_context>

<pallas_src>
import functools

import jax
import jax.numpy as jnp
from jax import lax
from jax.experimental import pallas as pl
from jax.experimental.pallas import tpu as pltpu


def _shortcut_kernel(x_ref, sel_ref, o_ref, *, bn, C, HoWo, pad):
    """x_ref: (bn*C, H*W); sel_ref: (H*W, Ho*Wo); o_ref: (bn, C+2*pad, Ho*Wo)."""
    # One full-width MXU matmul per grid step performs the stride-2 subsample
    # in both H and W (non-selected pixels hit all-zero selector rows/cols).
    # HIGHEST precision keeps the one-hot "copy" bit-exact for f32 inputs.
    y = jnp.dot(
        x_ref[...],
        sel_ref[...],
        preferred_element_type=jnp.float32,
        precision=lax.Precision.HIGHEST,
    )  # (bn*C, Ho*Wo)

    if pad > 0:
        zeros = jnp.zeros((bn, pad, HoWo), dtype=o_ref.dtype)
        o_ref[:, 0:pad, :] = zeros                 # leading channel pad, whole slab
        o_ref[:, pad + C:, :] = zeros              # trailing channel pad, whole slab

    # At ResNet scale C is a multiple of 8, so this reshape is a pure view.
    o_ref[:, pad:pad + C, :] = y.reshape(bn, C, HoWo).astype(o_ref.dtype)


def _round_up(v, m):
    return (v + m - 1) // m * m


def _pick_batch_block(N, C, HW, Co, HoWo, itemsize,
                      vmem_budget_bytes=20 * 1024 * 1024, max_bn=64):
    """Pick the per-step batch block bn.

    Constraints / preferences:
      (a) bn divides N, and (bn*C) is a multiple of 8 or bn == N, so the
          (bn*C, HW) input block is legal under the (8,128)/full-dim rule.
      (b) Double-buffered, tile-padded in+out blocks plus the selector fit in a
          conservative VMEM budget (safe on v5e/v6e defaults and v7x's 64 MiB).
      (c) Prefer an even grid-step count >= 4 so both v7x TensorCores get work
          and each keeps a pipelined stream; otherwise prefer the largest bn
          (fewer ~0.35 us grid-step overheads).
    """
    def fits(bn):
        in_b = _round_up(bn * C, 8) * _round_up(HW, 128) * itemsize
        out_b = bn * _round_up(Co, 8) * _round_up(HoWo, 128) * itemsize
        sel_b = _round_up(HW, 8) * _round_up(HoWo, 128) * itemsize
        return 2 * (in_b + out_b + sel_b) <= vmem_budget_bytes

    cands = [bn for bn in range(1, min(max_bn, N) + 1)
             if N % bn == 0 and (bn == N or (bn * C) % 8 == 0) and fits(bn)]
    if not cands:
        # Legality beats the budget heuristic (vmem_limit_bytes gives headroom).
        legal = [bn for bn in range(1, N + 1)
                 if N % bn == 0 and (bn == N or (bn * C) % 8 == 0)]
        return legal[0]

    def score(bn):
        steps = N // bn
        good_split = (steps >= 4 and steps % 2 == 0) or N < 4
        return (good_split, bn)

    return max(cands, key=score)


def lambda_layer(x, pad):
    """x: (N, C, H, W) -> F.pad(x[:, :, ::2, ::2], channel pad `pad` each side)."""
    N, C, H, W = x.shape
    Ho, Wo = (H + 1) // 2, (W + 1) // 2            # PyTorch ::2 keeps ceil(H/2)
    HW, HoWo = H * W, Ho * Wo
    Co = C + 2 * pad

    # Free row-major reshape: (N, C, H, W) -> (N*C, H*W) (lane-dense input).
    x2 = x.reshape(N * C, HW)

    # One-hot selector over the flattened spatial dim:
    #   sel[h*W + w, p*Wo + q] = 1  iff  h == 2p and w == 2q.
    # Handles odd H/W naturally (never selects the last row/col when odd).
    hh = jnp.arange(HW) // W
    ww = jnp.arange(HW) % W
    pp = jnp.arange(HoWo) // Wo
    qq = jnp.arange(HoWo) % Wo
    sel = ((hh[:, None] == 2 * pp[None, :]) &
           (ww[:, None] == 2 * qq[None, :])).astype(x.dtype)

    itemsize = jnp.dtype(x.dtype).itemsize
    bn = _pick_batch_block(N, C, HW, Co, HoWo, itemsize)

    kernel = functools.partial(_shortcut_kernel, bn=bn, C=C, HoWo=HoWo, pad=pad)

    out = pl.pallas_call(
        kernel,
        out_shape=jax.ShapeDtypeStruct((N, Co, HoWo), x.dtype),
        grid_spec=pltpu.PrefetchScalarGridSpec(
            num_scalar_prefetch=0,
            grid=(N // bn,),
            in_specs=[
                pl.BlockSpec((bn * C, HW), lambda n: (n, 0)),
                pl.BlockSpec((HW, HoWo), lambda n: (0, 0)),
            ],
            out_specs=pl.BlockSpec((bn, Co, HoWo), lambda n: (n, 0, 0)),
        ),
        compiler_params=pltpu.CompilerParams(
            dimension_semantics=("parallel",),
            vmem_limit_bytes=32 * 1024 * 1024,
        ),
    )(x2, sel)

    # Free reshape back to NCHW.
    return out.reshape(N, Co, Ho, Wo)


if __name__ == "__main__":
    key = jax.random.PRNGKey(0)
    N, C, H, W = 2, 4, 16, 16
    planes = 2 * C          # option-A shortcut doubles the channel count
    pad = planes // 4       # = 2

    x = jax.random.normal(key, (N, C, H, W), dtype=jnp.float32)

    out = jax.block_until_ready(lambda_layer(x, pad))

    # Pure-JAX reference of the PyTorch lambda.
    ref = jnp.pad(x[:, :, ::2, ::2], ((0, 0), (pad, pad), (0, 0), (0, 0)))
    assert out.shape == (N, C + 2 * pad, H // 2, W // 2), out.shape
    assert out.dtype == x.dtype
    assert jnp.allclose(out, ref, atol=0.0, rtol=0.0), "kernel mismatch vs reference"

    print("KERNEL_OK")
</pallas_src>

<mosaic_0001>
module attributes {stable_mosaic.version = 11 : i64} {
  func.func @_shortcut_kernel(%arg0: i32, %arg1: memref<8x256xf32, #tpu.memory_space<vmem>>, %arg2: memref<256x64xf32, #tpu.memory_space<vmem>>, %arg3: memref<2x8x64xf32, #tpu.memory_space<vmem>>) attributes {dimension_semantics = [#tpu.dimension_semantics<parallel>], iteration_bounds = array<i64: 1>, scalar_prefetch = 0 : i64, scratch_operands = 0 : i64, tpu.core_type = #tpu.core_type<tc>, window_params = [{transform_indices = @transform_0, window_bounds = array<i64: 8, 256>}, {pipeline_mode = #tpu.pipeline_mode<synchronous>, transform_indices = @transform_1, window_bounds = array<i64: 256, 64>}, {transform_indices = @transform_2, window_bounds = array<i64: 2, 8, 64>}]} {
    %c0 = arith.constant 0 : index
    %c0_0 = arith.constant 0 : index
    %0 = vector.load %arg1[%c0, %c0_0] : memref<8x256xf32, #tpu.memory_space<vmem>>, vector<8x256xf32>
    %c0_1 = arith.constant 0 : index
    %c0_2 = arith.constant 0 : index
    %1 = vector.load %arg2[%c0_1, %c0_2] : memref<256x64xf32, #tpu.memory_space<vmem>>, vector<256x64xf32>
    %cst = arith.constant dense<0.000000e+00> : vector<8x64xf32>
    %2 = tpu.matmul %0, %1, %cst {dimension_numbers = #tpu.dot_dimension_numbers<[1], [0], [0], [1], [0, 0, 1, 1], [], []>, precision = #tpu.contract_precision<fp32>} : vector<8x256xf32>, vector<256x64xf32>, vector<8x64xf32> -> vector<8x64xf32>
    %cst_3 = arith.constant 0.000000e+00 : f32
    %3 = vector.broadcast %cst_3 : f32 to vector<2x2x64xf32>
    %c0_4 = arith.constant 0 : index
    %c0_5 = arith.constant 0 : index
    %c0_6 = arith.constant 0 : index
    %4 = vector.load %arg3[%c0_4, %c0_5, %c0_6] : memref<2x8x64xf32, #tpu.memory_space<vmem>>, vector<2x2x64xf32>
    tpu.vector_store %arg3[%c0_4, %c0_5, %c0_6], %3 {strides = array<i32>} : memref<2x8x64xf32, #tpu.memory_space<vmem>>, vector<2x2x64xf32>,
    %c0_7 = arith.constant 0 : index
    %c6 = arith.constant 6 : index
    %c0_8 = arith.constant 0 : index
    %5 = vector.load %arg3[%c0_7, %c6, %c0_8] : memref<2x8x64xf32, #tpu.memory_space<vmem>>, vector<2x2x64xf32>
    tpu.vector_store %arg3[%c0_7, %c6, %c0_8], %3 {strides = array<i32>} : memref<2x8x64xf32, #tpu.memory_space<vmem>>, vector<2x2x64xf32>,
    %6 = vector.shape_cast %2 : vector<8x64xf32> to vector<2x4x64xf32>
    %c0_9 = arith.constant 0 : index
    %c2 = arith.constant 2 : index
    %c0_10 = arith.constant 0 : index
    %7 = vector.load %arg3[%c0_9, %c2, %c0_10] : memref<2x8x64xf32, #tpu.memory_space<vmem>>, vector<2x4x64xf32>
    tpu.vector_store %arg3[%c0_9, %c2, %c0_10], %6 {strides = array<i32>} : memref<2x8x64xf32, #tpu.memory_space<vmem>>, vector<2x4x64xf32>,
    return
  }
  func.func @transform_0(%arg0: i32) -> (i32, i32) {
    %c0_i32 = arith.constant 0 : i32
    %c0_i32_0 = arith.constant 0 : i32
    return %arg0, %c0_i32 : i32, i32
  }
  func.func @transform_1(%arg0: i32) -> (i32, i32) {
    %c0_i32 = arith.constant 0 : i32
    %c0_i32_0 = arith.constant 0 : i32
    %c0_i32_1 = arith.constant 0 : i32
    return %c0_i32, %c0_i32_0 : i32, i32
  }
  func.func @transform_2(%arg0: i32) -> (i32, i32, i32) {
    %c0_i32 = arith.constant 0 : i32
    %c0_i32_0 = arith.constant 0 : i32
    %c0_i32_1 = arith.constant 0 : i32
    return %arg0, %c0_i32, %c0_i32_0 : i32, i32, i32
  }
}

</mosaic_0001>

<bundles_post_ra>
// kernel: tpu_custom_call.1
= control target key start
LH: loop header
LB: loop body
LE: loop exit
PB: predicated region body
PF: predicated region fallthrough
CT: control target
= control target key end

     0   :  { %s1901_s0 = inlined_call_operand.vmem [shape: f32[8,256], index: 0, kind: input, shape index: {}]   ;;  %s1902_s1 = inlined_call_operand.vmem [shape: f32[256,64], index: 1, kind: input, shape index: {}]   ;;  %s1903_s2 = inlined_call_operand.hbm [shape: f32[2,8,64], index: 2, kind: output, shape index: {}]  }
   0x1   :  { %v45_v0 = vld [vmem:[%s1902_s1 + $0xf8] sm:$0xff]  ;;  %v44_v2 = vld [vmem:[%s1902_s1 + $0xf0] sm:$0xff]  ;;  %v43_v7 = vld [vmem:[%s1902_s1 + $0xe8] sm:$0xff] }
   0x2   :  { %v29_v1 = vld [vmem:[%s1902_s1 + $0x78] sm:$0xff]  ;;  %v1199_v3 = vand.u32 4294901760, %v45_v0  ;;  %v1203_v5 = vand.u32 4294901760, %v44_v2  ;;  %v28_v6 = vld [vmem:[%s1902_s1 + $0x70] sm:$0xff]  ;;  %v27_v8 = vld [vmem:[%s1902_s1 + $0x68] sm:$0xff]  ;;  %v1216_v10 = vand.u32 4294901760, %v43_v7 }
   0x3   :  { %v1201_v4 = vand.u32 4294901760, %v29_v1  ;;  %v1214_v9 = vand.u32 4294901760, %v28_v6  ;;  %v1218_v11 = vand.u32 4294901760, %v27_v8  ;;  %v42_v12 = vld [vmem:[%s1902_s1 + $0xe0] sm:$0xff]  ;;  %v1229_v14 = vld [vmem:[%s1902_s1 + $0xd8] sm:$0xff]  ;;  %v1250_v20 = vld [vmem:[%s1902_s1 + $0xd0] sm:$0xff] }
   0x4   :  { %v26_v13 = vld [vmem:[%s1902_s1 + $0x60] sm:$0xff]  ;;  %935 = vmatprep.subr.mxu0 %v1199_v3  ;;  %v1232_v15 = vand.u32 4294901760, %v42_v12  ;;  %v1237_v17 = vand.u32 4294901760, %v1229_v14  ;;  %v1240_v18 = vsub.f32 %v45_v0, %v1199_v3  ;;  %v1245_v19 = vld [vmem:[%s1902_s1 + $0x58] sm:$0xff]  ;;  %v1255_v21 = vld [vmem:[%s1902_s1 + $0x50] sm:$0xff]  ;;  %v1265_v24 = vand.u32 4294901760, %v1250_v20 }
   0x5   :  { %v1234_v16 = vand.u32 4294901760, %v26_v13  ;;  %936 = vmatpush3.msra.mxu0 %v1201_v4  ;;  %v1259_v22 = vand.u32 4294901760, %v1245_v19  ;;  %v1262_v23 = vsub.f32 %v29_v1, %v1201_v4  ;;  %v1268_v25 = vsub.f32 %v44_v2, %v1203_v5  ;;  %v1273_v26 = vld [vmem:[%s1902_s1 + $0xc8] sm:$0xff]  ;;  %v1283_v28 = vld [vmem:[%s1902_s1 + $0xc0] sm:$0xff]  ;;  %v1335_v46 = vld [vmem:[%s1902_s1 + $0xb8] sm:$0xff] }
   0x6   :  { %v1278_v27 = vld [vmem:[%s1902_s1 + $0x48] sm:$0xff]  ;;  %937 = vmatprep.subr.mxu0 %v1203_v5  ;;  %v1917_v29 = vand.u32 4294901760, %v1240_v18  ;;  %v1288_v30 = vand.u32 4294901760, %v1255_v21  ;;  %v1291_v31 = vsub.f32 %v28_v6, %v1214_v9  ;;  %v1294_v32 = vand.u32 4294901760, %v1273_v26  ;;  %v1308_v37 = vld [vmem:[%s1902_s1 + $0x40] sm:$0xff]  ;;  %v1348_v51 = vld [vmem:[%s1902_s1 + $0x38] sm:$0xff] }
   0x7   :  { %938 = vmatpush3.msra.mxu0 %v1214_v9  ;;  %v1916_v33 = vand.u32 4294901760, %v1262_v23  ;;  %v1914_v34 = vand.u32 4294901760, %v1268_v25  ;;  %v1300_v35 = vsub.f32 %v43_v7, %v1216_v10  ;;  %v1303_v36 = vand.u32 4294901760, %v1278_v27  ;;  %v1358_v56 = vld [vmem:[%s1902_s1 + $0xb0] sm:$0xff] }
   0x8   :  { %1973 = vst [vmem:[#allocation5_spill] sm:$0xff] %v1288_v30  ;;  %1974 = vst [vmem:[#allocation6_spill] sm:$0xff] %v1294_v32  ;;  %939 = vmatprep.subr.mxu0 %v1216_v10  ;;  %v274_v38 = vsub.f32 %v1240_v18, %v1917_v29  ;;  %v1913_v39 = vand.u32 4294901760, %v1291_v31  ;;  %v1316_v40 = vsub.f32 %v27_v8, %v1218_v11  ;;  %v1319_v41 = vand.u32 4294901760, %v1283_v28  ;;  %v1373_v61 = vld [vmem:[%s1902_s1 + $0x30] sm:$0xff] }
   0x9   :  { %1975 = vst [vmem:[#allocation7_spill] sm:$0xff] %v1303_v36  ;;  %940 = vmatpush3.msra.mxu0 %v1218_v11  ;;  %v162_v42 = vsub.f32 %v1262_v23, %v1916_v33  ;;  %v281_v43 = vsub.f32 %v1268_v25, %v1914_v34  ;;  %v1911_v44 = vand.u32 4294901760, %v1300_v35  ;;  %v1330_v45 = vsub.f32 %v42_v12, %v1232_v15 }
   0xa   :  { %1976 = vst [vmem:[#allocation8_spill] sm:$0xff] %v1319_v41  ;;  %941 = vmatprep.subr.mxu0 %v1232_v15  ;;  %v275_v47 = vand.u32 4294901760, %v274_v38  ;;  %v169_v48 = vsub.f32 %v1291_v31, %v1913_v39  ;;  %v1909_v49 = vand.u32 4294901760, %v1316_v40  ;;  %v1343_v50 = vand.u32 4294901760, %v1308_v37 }
   0xb   :  { %942 = vmatpush3.msra.mxu0 %v1234_v16  ;;  %v163_v52 = vand.u32 4294901760, %v162_v42  ;;  %v282_v53 = vand.u32 4294901760, %v281_v43  ;;  %v288_v54 = vsub.f32 %v1300_v35, %v1911_v44  ;;  %v1908_v55 = vand.u32 4294901760, %v1330_v45 }
   0xc   :  { %1977 = vst [vmem:[#allocation9_spill] sm:$0xff] %v1343_v50  ;;  %943 = vmatprep.subr.mxu0 %v1237_v17  ;;  %970 = vmatprep.subr.mxu1 %v275_v47  ;;  %v170_v57 = vand.u32 4294901760, %v169_v48  ;;  %v176_v58 = vsub.f32 %v1316_v40, %v1909_v49  ;;  %v1365_v59 = vsub.f32 %v26_v13, %v1234_v16  ;;  %v1368_v60 = vand.u32 4294901760, %v1335_v46 }
   0xe   :  { %1978 = vst [vmem:[#allocation10_spill] sm:$0xff] %v1368_v60 }
   0xf   :  { %7 = vsyncpa [#allocation3], 0  ;;  %944 = vmatpush3.msra.mxu0 %v1259_v22  ;;  %971 = vmatpush3.msra.mxu1 %v163_v52  ;;  %v289_v62 = vand.u32 4294901760, %v288_v54  ;;  %v295_v63 = vsub.f32 %v1330_v45, %v1908_v55  ;;  %v1381_v0 = vsub.f32 %v1229_v14, %v1237_v17  ;;  %v1384_v1 = vand.u32 4294901760, %v1348_v51  ;;  %v1389_v2 = vld [vmem:[%s1902_s1 + $0xa8] sm:$0xff]  ;;  %v1482_v49 = vld [vmem:[%s1902_s1 + $0x18] sm:$0xff] }
  0x10   :  { %945 = vmatprep.subr.mxu0 %v1265_v24  ;;  %972 = vmatprep.subr.mxu1 %v282_v53  ;;  %v177_v6 = vand.u32 4294901760, %v176_v58  ;;  %v1906_v7 = vand.u32 4294901760, %v1365_v59  ;;  %v1395_v8 = vsub.f32 %v1245_v19, %v1259_v22  ;;  %v1398_v12 = vand.u32 4294901760, %v1358_v56  ;;  %v1403_v13 = vld [vmem:[%s1902_s1 + $0x28] sm:$0xff]  ;;  %v1498_v44 = vld [vmem:[%s1902_s1 + $0x90] sm:$0xff] }
  0x11   :  { %1979 = vst [vmem:[#allocation11_spill] sm:$0xff] %v1384_v1  ;;  %946 = vmatpush3.msra.mxu0 %v1288_v30  ;;  %973 = vmatpush3.msra.mxu1 %v170_v57  ;;  %v296_v14 = vand.u32 4294901760, %v295_v63  ;;  %v1904_v38 = vand.u32 4294901760, %v1381_v0  ;;  %v1409_v42 = vsub.f32 %v1250_v20, %v1265_v24  ;;  %v1412_v19 = vand.u32 4294901760, %v1373_v61  ;;  %v1429_v20 = vld [vmem:[%s1902_s1 + $0xa0] sm:$0xff]  ;;  %v1525_v33 = vld [vmem:[%s1902_s1 + $0x88] sm:$0xff] }
  0x12   :  { %1980 = vst [vmem:[#allocation12_spill] sm:$0xff] %v1398_v12  ;;  %947 = vmatprep.subr.mxu0 %v1294_v32  ;;  %974 = vmatprep.subr.mxu1 %v289_v62  ;;  %v183_v43 = vsub.f32 %v1365_v59, %v1906_v7  ;;  %v1905_v47 = vand.u32 4294901760, %v1395_v8  ;;  %v1421_v48 = vsub.f32 %v1255_v21, %v1288_v30  ;;  %v1424_v52 = vand.u32 4294901760, %v1389_v2 }
  0x13   :  { %1981 = vst [vmem:[#allocation13_spill] sm:$0xff] %v1412_v19  ;;  %948 = vmatpush3.msra.mxu0 %v1303_v36  ;;  %975 = vmatpush3.msra.mxu1 %v177_v6  ;;  %v302_v53 = vsub.f32 %v1381_v0, %v1904_v38  ;;  %v1907_v54 = vand.u32 4294901760, %v1409_v42  ;;  %v1438_v21 = vsub.f32 %v1273_v26, %v1294_v32  ;;  %v1441_v57 = vand.u32 4294901760, %v1403_v13  ;;  %v1455_v26 = vld [vmem:[%s1902_s1 + $0x20] sm:$0xff] }
  0x14   :  { %1982 = vst [vmem:[#allocation14_spill] sm:$0xff] %v1424_v52  ;;  %949 = vmatprep.subr.mxu0 %v1319_v41  ;;  %976 = vmatprep.subr.mxu1 %v296_v14  ;;  %v184_v58 = vand.u32 4294901760, %v183_v43  ;;  %v190_v62 = vsub.f32 %v1395_v8, %v1905_v47  ;;  %v1910_v63 = vand.u32 4294901760, %v1421_v48  ;;  %v1450_v6 = vsub.f32 %v1278_v27, %v1303_v36  ;;  %v1468_v27 = vld [vmem:[%s1902_s1 + $0x98] sm:$0xff] }
  0x15   :  { %1983 = vst [vmem:[#allocation15_spill] sm:$0xff] %v1441_v57  ;;  %950 = vmatpush3.msra.mxu0 %v1343_v50  ;;  %v303_v38 = vand.u32 4294901760, %v302_v53  ;;  %v309_v14 = vsub.f32 %v1409_v42, %v1907_v54  ;;  %v1912_v43 = vand.u32 4294901760, %v1438_v21  ;;  %v1463_v47 = vand.u32 4294901760, %v1429_v20 }
  0x16   :  { %977 = vmatpush3.msra.mxu1 %v184_v58  ;;  %951 = vmatprep.subr.mxu0 %v1368_v60  ;;  %v191_v7 = vand.u32 4294901760, %v190_v62  ;;  %v197_v53 = vsub.f32 %v1421_v48, %v1910_v63  ;;  %v1915_v54 = vand.u32 4294901760, %v1450_v6  ;;  %v1477_v55 = vsub.f32 %v1283_v28, %v1319_v41  ;;  %v12_v41 = vld [vmem:[%s1901_s0] sm:$0xff] }
  0x17   :  { %1984 = vst [vmem:[#allocation16_spill] sm:$0xff] %v1463_v47  ;;  %978 = vmatprep.subr.mxu1 %v303_v38  ;;  %952 = vmatpush3.msra.mxu0 %v1384_v1  ;;  %v310_v58 = vand.u32 4294901760, %v309_v14  ;;  %v316_v62 = vsub.f32 %v1438_v21, %v1912_v43  ;;  %v1489_v63 = vand.u32 4294901760, %v1455_v26  ;;  %v1493_v28 = vsub.f32 %v1308_v37, %v1343_v50  ;;  %v1511_v37 = vld [vmem:[%s1902_s1 + $0x10] sm:$0xff] }
  0x18   :  { %979 = vmatpush3.msra.mxu1 %v191_v7  ;;  %953 = vmatprep.subr.mxu0 %v1398_v12  ;;  %v198_v38 = vand.u32 4294901760, %v197_v53  ;;  %v204_v14 = vsub.f32 %v1450_v6, %v1915_v54  ;;  %v1920_v43 = vand.u32 4294901760, %v1477_v55  ;;  %v1506_v39 = vand.u32 4294901760, %v1468_v27 }
  0x19   :  { %1985 = vst [vmem:[#allocation17_spill] sm:$0xff] %v1489_v63  ;;  %980 = vmatprep.subr.mxu1 %v310_v58  ;;  %954 = vmatpush3.msra.mxu0 %v1412_v19  ;;  %v317_v7 = vand.u32 4294901760, %v316_v62  ;;  %v1921_v53 = vand.u32 4294901760, %v1493_v28  ;;  %v1517_v34 = vsub.f32 %v1335_v46, %v1368_v60  ;;  %v1520_v54 = vand.u32 4294901760, %v1482_v49 }
  0x1a   :  { %981 = vmatpush3.msra.mxu1 %v198_v38  ;;  %955 = vmatprep.subr.mxu0 %v1424_v52  ;;  %v205_v58 = vand.u32 4294901760, %v204_v14  ;;  %v323_v62 = vsub.f32 %v1477_v55, %v1920_v43  ;;  %v1533_v46 = vsub.f32 %v1348_v51, %v1384_v1  ;;  %v1536_v29 = vand.u32 4294901760, %v1498_v44  ;;  %v1553_v51 = vld [vmem:[%s1902_s1 + $0x8] sm:$0xff] }
  0x1b   :  { %1986 = vst [vmem:[#allocation18_spill] sm:$0xff] %v1520_v54  ;;  %982 = vmatprep.subr.mxu1 %v317_v7  ;;  %956 = vmatpush3.msra.mxu0 %v1441_v57  ;;  %v211_v38 = vsub.f32 %v1493_v28, %v1921_v53  ;;  %v1545_v60 = vsub.f32 %v1358_v56, %v1398_v12  ;;  %v1548_v43 = vand.u32 4294901760, %v1511_v37  ;;  %v1562_v56 = vand.u32 4294901760, %v1525_v33  ;;  %v1567_v12 = vld [vmem:[%s1902_s1 + $0x80] sm:$0xff] }
  0x1c   :  { %1987 = vst [vmem:[#allocation19_spill] sm:$0xff] %v1536_v29  ;;  %983 = vmatpush3.msra.mxu1 %v205_v58  ;;  %957 = vmatprep.subr.mxu0 %v1463_v47  ;;  %v324_v7 = vand.u32 4294901760, %v323_v62  ;;  %v1559_v14 = vsub.f32 %v1373_v61, %v1412_v19  ;;  %v1991_v1 = vand.u32 4294901760, %v1517_v34  ;;  %v1576_v61 = vsub.f32 %v1389_v2, %v1424_v52  ;;  %v1593_v2 = vld [vmem:[%s1902_s1] sm:$0xff] }
  0x1d   :  { %1988 = vst [vmem:[#allocation20_spill] sm:$0xff] %v1548_v43  ;;  %1990 = vst [vmem:[#allocation22_spill] sm:$0xff] %v1562_v56  ;;  %958 = vmatpush3.msra.mxu0 %v1489_v63  ;;  %v212_v58 = vand.u32 4294901760, %v211_v38  ;;  %v1938_v53 = vand.u32 4294901760, %v1545_v60  ;;  %v1993_v19 = vand.u32 4294901760, %v1533_v46  ;;  %v1584_v38 = vand.u32 4294901760, %v1553_v51 }
  0x1e   :  { %1989 = vst [vmem:[#allocation21_spill] sm:$0xff] %v1559_v14  ;;  %v330_v62 = vsub.f32 %v1517_v34, %v1991_v1  ;;  %1992 = vst [vmem:[#allocation23_spill] sm:$0xff] %v1576_v61  ;;  %984 = vmatprep.subr.mxu1 %v324_v7  ;;  %959 = vmatprep.subr.mxu0 %v1506_v39  ;;  %v1588_v1 = vsub.f32 %v1403_v13, %v1441_v57  ;;  %v1601_v52 = vand.u32 4294901760, %v1567_v12  ;;  %v13_v13 = vld [vmem:[%s1901_s0 + $0x8] sm:$0xff]  ;;  %vm908_vm0 = vcmask 517120   ;;  %s1172_s0 = smov [#allocation2]  }
  0x1f   :  { %v218_v50 = vsub.f32 %v1533_v46, %v1993_v19  ;;  %985 = vmatpush3.msra.mxu1 %v212_v58  ;;  %960 = vmatpush3.msra.mxu0 %v1520_v54  ;;  %v337_v19 = vsub.f32 %v1545_v60, %v1938_v53  ;;  %v1994_v58 = vand.u32 4294901760, %v1559_v14  ;;  %v1613_v53 = vsub.f32 %v1429_v20, %v1463_v47  ;;  %s924_s20 = sshll.u32 %s1172_s0, 4  ;;  %s925_s20 = int_to_ptr.vmem [resolvable:$true] %s924_s20 }
  0x20   :  { %v331_v7 = vand.u32 4294901760, %v330_v62  ;;  %961 = vmatprep.subr.mxu0 %v1536_v29  ;;  %v1627_v36 = vsub.f32 %v1455_v26, %v1489_v63  ;;  %v1642_v26 = vand.u32 4294901760, %v12_v41  ;;  %vm916_vm1 = vcmask 519168   ;;  %s1149_s21 = scalar_lea.vmem %s925_s20, 256  ;;  %p1154_p1 = scmp.lt.s32.totalorder %s925_s20, %s925_s20 }
  0x21   :  { %v219_v57 = vand.u32 4294901760, %v218_v50  ;;  %v225_v62 = vsub.f32 %v1559_v14, %v1994_v58  ;;  %v338_v32 = vand.u32 4294901760, %v337_v19  ;;  %962 = vmatpush3.msra.mxu0 %v1548_v43  ;;  %v1995_v50 = vand.u32 4294901760, %v1576_v61  ;;  %p1150_p0 = scmp.ne.s32.totalorder %s925_s20, %s1149_s21  ;;  %p1155_p2 = scmp.lt.s32.totalorder %s1149_s21, %s1149_s21 }
  0x22   :  { %986 = vmatprep.subr.mxu1 %v331_v7  ;;  %v1623_v58 = vand.u32 4294901760, %v1593_v2  ;;  %963 = vmatprep.subr.mxu0 %v1562_v56  ;;  %v1996_v7 = vand.u32 4294901760, %v1588_v1  ;;  %v1949_v47 = vand.u32 4294901760, %v1613_v53  ;;  %v1634_v14 = vand.u32 4294901760, %v13_v13  ;;  %1998 = vst [vmem:[#allocation25_spill] sm:$0xff] %v1642_v26 }
  0x23   :  { %v344_v30 = vsub.f32 %v1576_v61, %v1995_v50  ;;  %987 = vmatpush3.msra.mxu1 %v219_v57  ;;  %v226_v20 = vand.u32 4294901760, %v225_v62  ;;  %964 = vmatpush3.msra.mxu0 %v1584_v38  ;;  %v1950_v61 = vand.u32 4294901760, %v1627_v36  ;;  %v1640_v57 = vsub.f32 %v1468_v27, %v1506_v39  ;;  %p1156_p3 = por %p1155_p2, %p1154_p1 }
  0x24   :  { %v232_v19 = vsub.f32 %v1588_v1, %v1996_v7  ;;  %1997 = vst [vmem:[#allocation24_spill] sm:$0xff] %v1634_v14  ;;  %988 = vmatprep.subr.mxu1 %v338_v32  ;;  %965 = vmatprep.subr.mxu0 %v1601_v52  ;;  %v351_v7 = vsub.f32 %v1613_v53, %v1949_v47 }
  0x25   :  { %v345_v50 = vand.u32 4294901760, %v344_v30  ;;  %989 = vmatpush3.msra.mxu1 %v226_v20  ;;  %v1649_v30 = vsub.f32 %v13_v13, %v1634_v14  ;;  %v1653_v32 = vsub.f32 %v1482_v49, %v1520_v54  ;;  %966 = vmatpush3.msra.mxu0 %v1623_v58  ;;  %v239_v27 = vsub.f32 %v1627_v36, %v1950_v61  ;;  %p1157_p4 = pnand %p1156_p3, %p1150_p0 }
  0x26   :  { %v233_v62 = vand.u32 4294901760, %v232_v19  ;;  %v1661_v19 = vsub.f32 %v12_v41, %v1642_v26  ;;  %v1665_v13 = vsub.f32 %v1498_v44, %v1536_v29  ;;  %v352_v47 = vand.u32 4294901760, %v351_v7  ;;  %1005 = vmatprep.subr.mxu0 %v1240_v18  ;;  %383 = vmatprep.mubr.f32.mxu1 %v1634_v14 }
  0x27   :  { %990 = vmatprep.subr.mxu1 %v345_v50  ;;  %v1955_v49 = vand.u32 4294901760, %v1649_v30  ;;  %v1958_v50 = vand.u32 4294901760, %v1653_v32  ;;  %v1672_v61 = vsub.f32 %v1511_v37, %v1548_v43  ;;  %v240_v20 = vand.u32 4294901760, %v239_v27 }
  0x28   :  { %991 = vmatpush3.msra.mxu1 %v233_v62  ;;  %v1999_v41 = vand.u32 4294901760, %v1640_v57  ;;  %v2000_v62 = vand.u32 4294901760, %v1661_v19  ;;  %v2001_v14 = vand.u32 4294901760, %v1665_v13  ;;  %v1699_v43 = vsub.f32 %v1553_v51, %v1584_v38 }
  0x29   :  { %992 = vmatprep.subr.mxu1 %v352_v47  ;;  %v145_v7 = vsub.f32 %v1649_v30, %v1955_v49  ;;  %v246_v37 = vsub.f32 %v1653_v32, %v1958_v50  ;;  %v2003_v29 = vand.u32 4294901760, %v1672_v61 }
  0x2a   :  { %v358_v54 = vsub.f32 %v1640_v57, %v1999_v41  ;;  %v1689_v41 = vsub.f32 %v1525_v33, %v1562_v56  ;;  %993 = vmatpush3.msra.mxu1 %v240_v20  ;;  %v151_v47 = vsub.f32 %v1661_v19, %v2000_v62  ;;  %v365_v49 = vsub.f32 %v1665_v13, %v2001_v14 }
  0x2b   :  { %2002 = vst [vmem:[#allocation26_spill] sm:$0xff] %v1699_v43  ;;  %v146_v50 = vand.u32 4294901760, %v145_v7  ;;  %v247_v27 = vand.u32 4294901760, %v246_v37  ;;  %v253_v33 = vsub.f32 %v1672_v61, %v2003_v29  ;;  %v1965_v62 = vand.u32 4294901760, %v1699_v43 }
  0x2c   :  { %v359_v44 = vand.u32 4294901760, %v358_v54  ;;  %v1966_v54 = vand.u32 4294901760, %v1689_v41  ;;  %v152_v20 = vand.u32 4294901760, %v151_v47  ;;  %v366_v56 = vand.u32 4294901760, %v365_v49 }
  0x2d   :  { %v1708_v14 = vsub.f32 %v1567_v12, %v1601_v52  ;;  %147 = vmatprep.mubr.f32.mxu0 %v146_v50  ;;  %v254_v51 = vand.u32 4294901760, %v253_v33  ;;  %v1715_v29 = vsub.f32 %v1593_v2, %v1623_v58  ;;  %v260_v49 = vsub.f32 %v1699_v43, %v1965_v62  ;;  %v2006_v33 = vld [vmem:[#allocation21_spill] sm:$0xff]  ;;  %v2019_v62 = vld [vmem:[#allocation16_spill] sm:$0xff] }
  0x2e   :  { %994 = vmatprep.subr.mxu1 %v359_v44  ;;  %v372_v7 = vsub.f32 %v1689_v41, %v1966_v54  ;;  %153 = vmatmul.mubr.f32.vlgmr.msra.gmra.mxu0 %v152_v20  ;;  %v2007_v20 = vld [vmem:[#allocation5_spill] sm:$0xff]  ;;  %v2020_v54 = vand.u32 4294901760, %v1240_v18  ;;  %v2028_v18 = vand.u32 4294901760, %v1300_v35 }
  0x2f   :  { %2004 = vst [vmem:[#allocation27_spill] sm:$0xff] %v1708_v14  ;;  %995 = vmatpush3.msra.mxu1 %v247_v27  ;;  %2005 = vst [vmem:[#allocation28_spill] sm:$0xff] %v1715_v29  ;;  %v1964_v12 = vand.u32 4294901760, %v1708_v14  ;;  %1006 = vmatpush3.msra.mxu0 %v1262_v23  ;;  %v1963_v44 = vand.u32 4294901760, %v1715_v29  ;;  %v261_v37 = vand.u32 4294901760, %v260_v49  ;;  %v2010_v49 = vld [vmem:[#allocation7_spill] sm:$0xff] }
  0x30   :  { %996 = vmatprep.subr.mxu1 %v366_v56  ;;  %v373_v50 = vand.u32 4294901760, %v372_v7  ;;  %1007 = vmatprep.subr.mxu0 %v1268_v25  ;;  %v2009_v7 = vld [vmem:[#allocation6_spill] sm:$0xff] }
  0x31   :  { %997 = vmatpush3.msra.mxu1 %v254_v51  ;;  %v379_v2 = vsub.f32 %v1708_v14, %v1964_v12  ;;  %520 = vmatprep.mubr.f32.mxu0 %v1649_v30  ;;  %v267_v56 = vsub.f32 %v1715_v29, %v1963_v44  ;;  %v2008_v51 = vld [vmem:[#allocation23_spill] sm:$0xff]  ;;  %v2017_v44 = vld [vmem:[#allocation14_spill] sm:$0xff] }
  0x32   :  { %1008 = vmatpush3.msra.mxu0 %v1291_v31  ;;  %998 = vmatprep.subr.mxu1 %v373_v50  ;;  %v2011_v50 = vld [vmem:[#allocation8_spill] sm:$0xff]  ;;  %v2018_v12 = vld [vmem:[#allocation15_spill] sm:$0xff] }
  0x33   :  { %1009 = vmatprep.subr.mxu0 %v1300_v35  ;;  %999 = vmatpush3.msra.mxu1 %v261_v37  ;;  %v380_v27 = vand.u32 4294901760, %v379_v2  ;;  %v268_v47 = vand.u32 4294901760, %v267_v56  ;;  %v2012_v37 = vld [vmem:[#allocation9_spill] sm:$0xff]  ;;  %v2013_v2 = vld [vmem:[#allocation10_spill] sm:$0xff]  ;;  %v2014_v56 = vld [vmem:[#allocation11_spill] sm:$0xff]  ;;  %v2033_v35 = vand.u32 4294901760, %v1661_v19 }
  0x34   :  { %1010 = vmatpush3.msra.mxu0 %v1316_v40 }
  0x35   :  { %1000 = vmatprep.subr.mxu1 %v380_v27  ;;  %1011 = vmatprep.subr.mxu0 %v1330_v45  ;;  %v2015_v27 = vld [vmem:[#allocation12_spill] sm:$0xff] }
  0x36   :  { %1001 = vmatpush3.msra.mxu1 %v268_v47  ;;  %1012 = vmatpush3.msra.mxu0 %v1365_v59  ;;  %v2016_v47 = vld [vmem:[#allocation13_spill] sm:$0xff] }
  0x37   :  { %385 = vmatmul.mubr.f32.vlgmr.msra.gmra.mxu1 %v1642_v26  ;;  %1013 = vmatprep.subr.mxu0 %v1381_v0  ;;  %v2021_v26 = vld [vmem:[#allocation18_spill] sm:$0xff] }
  0x38   :  { %1040 = vmatprep.subr.mxu1 %v1199_v3  ;;  %1014 = vmatpush3.msra.mxu0 %v1395_v8 }
  0x39   :  { %1041 = vmatpush3.msra.mxu1 %v1201_v4  ;;  %1015 = vmatprep.subr.mxu0 %v1409_v42 }
  0x3a   :  { %1042 = vmatprep.subr.mxu1 %v1203_v5  ;;  %1016 = vmatpush3.msra.mxu0 %v1421_v48 }
  0x3b   :  { %1043 = vmatpush3.msra.mxu1 %v1214_v9  ;;  %1017 = vmatprep.subr.mxu0 %v1438_v21 }
  0x3c   :  { %1044 = vmatprep.subr.mxu1 %v1216_v10  ;;  %1018 = vmatpush3.msra.mxu0 %v1450_v6 }
  0x3d   :  { %1045 = vmatpush3.msra.mxu1 %v1218_v11  ;;  %1019 = vmatprep.subr.mxu0 %v1477_v55 }
  0x3e   :  { %1046 = vmatprep.subr.mxu1 %v1232_v15  ;;  %1020 = vmatpush3.msra.mxu0 %v1493_v28 }
  0x3f   :  { %1047 = vmatpush3.msra.mxu1 %v1234_v16  ;;  %1021 = vmatprep.subr.mxu0 %v1517_v34 }
  0x40   :  { %1048 = vmatprep.subr.mxu1 %v1237_v17  ;;  %1022 = vmatpush3.msra.mxu0 %v1533_v46 }
  0x41   :  { %1049 = vmatpush3.msra.mxu1 %v1259_v22  ;;  %1023 = vmatprep.subr.mxu0 %v1545_v60 }
  0x42   :  { %1050 = vmatprep.subr.mxu1 %v1265_v24  ;;  %1024 = vmatpush3.msra.mxu0 %v2006_v33 }
  0x43   :  { %1051 = vmatpush3.msra.mxu1 %v2007_v20  ;;  %1025 = vmatprep.subr.mxu0 %v2008_v51 }
  0x44   :  { %1052 = vmatprep.subr.mxu1 %v2009_v7  ;;  %1026 = vmatpush3.msra.mxu0 %v1588_v1 }
  0x45   :  { %1053 = vmatpush3.msra.mxu1 %v2010_v49  ;;  %1027 = vmatprep.subr.mxu0 %v1613_v53 }
  0x46   :  { %1054 = vmatprep.subr.mxu1 %v2011_v50  ;;  %1028 = vmatpush3.msra.mxu0 %v1627_v36 }
  0x47   :  { %1055 = vmatpush3.msra.mxu1 %v2012_v37  ;;  %1029 = vmatprep.subr.mxu0 %v1640_v57 }
  0x48   :  { %1056 = vmatprep.subr.mxu1 %v2013_v2  ;;  %1030 = vmatpush3.msra.mxu0 %v1653_v32 }
  0x49   :  { %1057 = vmatpush3.msra.mxu1 %v2014_v56  ;;  %1031 = vmatprep.subr.mxu0 %v1665_v13 }
  0x4a   :  { %1058 = vmatprep.subr.mxu1 %v2015_v27  ;;  %1032 = vmatpush3.msra.mxu0 %v1672_v61 }
  0x4b   :  { %1059 = vmatpush3.msra.mxu1 %v2016_v47  ;;  %1033 = vmatprep.subr.mxu0 %v1689_v41 }
  0x4c   :  { %1060 = vmatprep.subr.mxu1 %v2017_v44  ;;  %1034 = vmatpush3.msra.mxu0 %v1699_v43  ;;  %v2022_v43 = vand.u32 4294901760, %v1262_v23  ;;  %v2029_v23 = vand.u32 4294901760, %v1316_v40  ;;  %v2035_v40 = vand.u32 4294901760, %v1395_v8  ;;  %v2054_v8 = vand.u32 4294901760, %v1689_v41 }
  0x4d   :  { %1061 = vmatpush3.msra.mxu1 %v2018_v12  ;;  %1035 = vmatprep.subr.mxu0 %v1708_v14  ;;  %v2023_v12 = vld [vmem:[#allocation19_spill] sm:$0xff]  ;;  %v2027_v14 = vld [vmem:[#allocation22_spill] sm:$0xff] }
  0x4e   :  { %1062 = vmatprep.subr.mxu1 %v2019_v62  ;;  %1036 = vmatpush3.msra.mxu0 %v1715_v29  ;;  %v2024_v62 = vand.u32 4294901760, %v1268_v25  ;;  %v2025_v29 = vld [vmem:[#allocation20_spill] sm:$0xff]  ;;  %v2030_v25 = vand.u32 4294901760, %v1330_v45  ;;  %v2036_v45 = vand.u32 4294901760, %v1409_v42  ;;  %v2055_v42 = vld [vmem:[#allocation26_spill] sm:$0xff] }
  0x4f   :  { %1063 = vmatpush3.msra.mxu1 %v1489_v63  ;;  %523 = vmatmul.mubr.f32.vlgmr.msra.gmra.mxu0 %v1661_v19  ;;  %v2026_v63 = vand.u32 4294901760, %v1291_v31  ;;  %v2031_v31 = vand.u32 4294901760, %v1649_v30  ;;  %v2065_v30 = vld [vmem:[#allocation25_spill] sm:$0xff] }
  0x50   :  { %1064 = vmatprep.subr.mxu1 %v1506_v39  ;;  %1075 = vmatprep.subr.mxu0 %v2020_v54 }
  0x51   :  { %1065 = vmatpush3.msra.mxu1 %v2021_v26  ;;  %1076 = vmatpush3.msra.mxu0 %v2022_v43  ;;  %v2034_v43 = vand.u32 4294901760, %v1381_v0  ;;  %v2038_v0 = vand.u32 4294901760, %v1438_v21  ;;  %v2057_v21 = vld [vmem:[#allocation15_spill] sm:$0xff] }
  0x52   :  { %1066 = vmatprep.subr.mxu1 %v2023_v12  ;;  %1077 = vmatprep.subr.mxu0 %v2024_v62 }
  0x53   :  { %1067 = vmatpush3.msra.mxu1 %v2025_v29  ;;  %1078 = vmatpush3.msra.mxu0 %v2026_v63  ;;  %v2032_v63 = vand.u32 4294901760, %v1365_v59  ;;  %v2037_v59 = vand.u32 4294901760, %v1421_v48  ;;  %v2056_v48 = vand.u32 4294901760, %v2055_v42 }
  0x54   :  { %1068 = vmatprep.subr.mxu1 %v2027_v14  ;;  %1079 = vmatprep.subr.mxu0 %v2028_v18 }
  0x55   :  { %1069 = vmatpush3.msra.mxu1 %v1584_v38  ;;  %1080 = vmatpush3.msra.mxu0 %v2029_v23 }
  0x56   :  { %1070 = vmatprep.subr.mxu1 %v1601_v52  ;;  %1081 = vmatprep.subr.mxu0 %v2030_v25 }
  0x57   :  { %1071 = vmatpush3.msra.mxu1 %v1623_v58  ;;  %627 = vmatprep.mubr.f32.mxu1 %v2031_v31 }
  0x58   :  { %1082 = vmatpush3.msra.mxu0 %v2032_v63  ;;  %631 = vmatmul.mubr.f32.vlgmr.msra.gmra.mxu1 %v2033_v35 }
  0x59   :  { %1083 = vmatprep.subr.mxu0 %v2034_v43  ;;  %1110 = vmatprep.subr.mxu1 %v1199_v3  ;;  %v2039_v3 = vand.u32 4294901760, %v1450_v6  ;;  %v2058_v6 = vld [vmem:[#allocation27_spill] sm:$0xff] }
  0x5a   :  { %1084 = vmatpush3.msra.mxu0 %v2035_v40  ;;  %1111 = vmatpush3.msra.mxu1 %v1201_v4  ;;  %v2040_v4 = vand.u32 4294901760, %v1477_v55  ;;  %v2051_v55 = vand.u32 4294901760, %v1653_v32 }
  0x5b   :  { %1085 = vmatprep.subr.mxu0 %v2036_v45  ;;  %1112 = vmatprep.subr.mxu1 %v1203_v5  ;;  %v2041_v5 = vand.u32 4294901760, %v1493_v28  ;;  %v2059_v28 = vand.u32 4294901760, %v2058_v6 }
  0x5c   :  { %1086 = vmatpush3.msra.mxu0 %v2037_v59  ;;  %1113 = vmatpush3.msra.mxu1 %v1214_v9  ;;  %v2042_v9 = vand.u32 4294901760, %v1517_v34  ;;  %v2050_v34 = vand.u32 4294901760, %v1640_v57  ;;  %v2064_v57 = vld [vmem:[#allocation17_spill] sm:$0xff] }
  0x5d   :  { %1087 = vmatprep.subr.mxu0 %v2038_v0  ;;  %1114 = vmatprep.subr.mxu1 %v1216_v10  ;;  %v2043_v10 = vand.u32 4294901760, %v1533_v46  ;;  %v2061_v46 = vld [vmem:[#allocation28_spill] sm:$0xff] }
  0x5e   :  { %1088 = vmatpush3.msra.mxu0 %v2039_v3  ;;  %1115 = vmatpush3.msra.mxu1 %v1218_v11  ;;  %v2044_v11 = vand.u32 4294901760, %v1545_v60  ;;  %v2052_v60 = vand.u32 4294901760, %v1665_v13 }
  0x5f   :  { %1089 = vmatprep.subr.mxu0 %v2040_v4  ;;  %1116 = vmatprep.subr.mxu1 %v1232_v15  ;;  %v2045_v15 = vand.u32 4294901760, %v2006_v33 }
  0x60   :  { %1090 = vmatpush3.msra.mxu0 %v2041_v5  ;;  %1117 = vmatpush3.msra.mxu1 %v1234_v16  ;;  %v2046_v16 = vand.u32 4294901760, %v2008_v51 }
  0x61   :  { %1091 = vmatprep.subr.mxu0 %v2042_v9  ;;  %1118 = vmatprep.subr.mxu1 %v1237_v17  ;;  %v2047_v17 = vand.u32 4294901760, %v1588_v1  ;;  %v2063_v1 = vld [vmem:[#allocation24_spill] sm:$0xff] }
  0x62   :  { %1092 = vmatpush3.msra.mxu0 %v2043_v10  ;;  %1119 = vmatpush3.msra.mxu1 %v1259_v22  ;;  %v2048_v22 = vand.u32 4294901760, %v1613_v53  ;;  %v2060_v53 = vld [vmem:[#allocation16_spill] sm:$0xff] }
  0x63   :  { %1093 = vmatprep.subr.mxu0 %v2044_v11  ;;  %1120 = vmatprep.subr.mxu1 %v1265_v24  ;;  %v2049_v24 = vand.u32 4294901760, %v1627_v36  ;;  %v2053_v36 = vand.u32 4294901760, %v1672_v61  ;;  %v2062_v61 = vand.u32 4294901760, %v2061_v46 }
  0x64   :  { %1094 = vmatpush3.msra.mxu0 %v2045_v15  ;;  %1121 = vmatpush3.msra.mxu1 %v2007_v20 }
  0x65   :  { %1095 = vmatprep.subr.mxu0 %v2046_v16  ;;  %1122 = vmatprep.subr.mxu1 %v2009_v7 }
  0x66   :  { %1096 = vmatpush3.msra.mxu0 %v2047_v17  ;;  %1123 = vmatpush3.msra.mxu1 %v2010_v49 }
  0x67   :  { %1097 = vmatprep.subr.mxu0 %v2048_v22  ;;  %1124 = vmatprep.subr.mxu1 %v2011_v50 }
  0x68   :  { %1098 = vmatpush3.msra.mxu0 %v2049_v24  ;;  %1125 = vmatpush3.msra.mxu1 %v2012_v37 }
  0x69   :  { %1099 = vmatprep.subr.mxu0 %v2050_v34  ;;  %1126 = vmatprep.subr.mxu1 %v2013_v2 }
  0x6a   :  { %1100 = vmatpush3.msra.mxu0 %v2051_v55  ;;  %1127 = vmatpush3.msra.mxu1 %v2014_v56 }
  0x6b   :  { %1101 = vmatprep.subr.mxu0 %v2052_v60  ;;  %1128 = vmatprep.subr.mxu1 %v2015_v27 }
  0x6c   :  { %1102 = vmatpush3.msra.mxu0 %v2053_v36  ;;  %1129 = vmatpush3.msra.mxu1 %v2016_v47 }
  0x6d   :  { %1103 = vmatprep.subr.mxu0 %v2054_v8  ;;  %1130 = vmatprep.subr.mxu1 %v2017_v44 }
  0x6e   :  { %1104 = vmatpush3.msra.mxu0 %v2056_v48  ;;  %1131 = vmatpush3.msra.mxu1 %v2057_v21 }
  0x6f   :  { %1105 = vmatprep.subr.mxu0 %v2059_v28  ;;  %1132 = vmatprep.subr.mxu1 %v2060_v53 }
  0x70   :  { %1106 = vmatpush3.msra.mxu0 %v2062_v61  ;;  %797 = vmatprep.mubr.f32.mxu0 %v2063_v1 }
  0x71   :  { %1133 = vmatpush3.msra.mxu1 %v2064_v57  ;;  %799 = vmatmul.mubr.f32.vlgmr.msra.gmra.mxu0 %v2065_v30 }
  0x72   :  { %1134 = vmatprep.subr.mxu1 %v1506_v39  ;;  %901 = vmatprep.mubr.f32.mxu1 %v2063_v1  ;;  %v1171_v39 = vmov 0.0  }
  0x73   :  { %1135 = vmatpush3.msra.mxu1 %v2021_v26  ;;  %909 = vst.msk [vmem:[#allocation2] sm:$0x3] %vm908_vm0, %v1171_v39  ;;  %910 = vst.msk [vmem:[#allocation2 + $0x8] sm:$0x3] %vm908_vm0, %v1171_v39 }
  0x74   :  { %1136 = vmatprep.subr.mxu1 %v2023_v12  ;;  %911 = vst.msk [vmem:[#allocation2 + $0x6] sm:$0x3] %vm908_vm0, %v1171_v39  ;;  %912 = vst.msk [vmem:[#allocation2 + $0xe] sm:$0x3] %vm908_vm0, %v1171_v39 }
  0x75   :  { %1137 = vmatpush3.msra.mxu1 %v2025_v29 }
  0x76   :  { %1138 = vmatprep.subr.mxu1 %v2027_v14 }
  0x77   :  { %1139 = vmatpush3.msra.mxu1 %v1584_v38 }
  0x78   :  { %1140 = vmatprep.subr.mxu1 %v1601_v52 }
  0x79   :  { %1141 = vmatpush3.msra.mxu1 %v1623_v58 }
  0x7a   :  { %903 = vmatmul.mubr.f32.vlgmr.msra.gmra.mxu1 %v2065_v30 }
  0xee   :  { %v967_v26 = vpop.f32.mrf.mxu0 }
  0xf0   :  { %v968_v32 = vpop.f32.mrf.mxu0 }
  0xf1   :  { %v969_v29 = vadd.f32 %v968_v32, %v967_v26 }
  0xf7   :  { %v1002_v19 = vpop.f32.mrf.mxu1 }
  0xf9   :  { %v1003_v41 = vpop.f32.mrf.mxu1 }
  0xfa   :  { %v1004_v14 = vadd.f32 %v1003_v41, %v1002_v19 }
  0xfc   :  { %v387_v44 = vadd.f32 %v1004_v14, %v969_v29 }
 0x10f   :  { %v1037_v13 = vpop.f32.mrf.mxu0 }
 0x111   :  { %v1038_v54 = vpop.f32.mrf.mxu0 }
 0x112   :  { %v1039_v58 = vadd.f32 %v1038_v54, %v1037_v13 }
 0x114   :  { %v525_v20 = vadd.f32 %v1039_v58, %v387_v44 }
 0x118   :  { %v1072_v62 = vpop.f32.mrf.mxu1 }
 0x11a   :  { %v1073_v52 = vpop.f32.mrf.mxu1 }
 0x11b   :  { %v1074_v33 = vadd.f32 %v1073_v52, %v1072_v62 }
 0x11d   :  { %v633_v49 = vadd.f32 %v1074_v33, %v525_v20 }
 0x131   :  { %v1107_v38 = vpop.f32.mrf.mxu0 }
 0x133   :  { %v1108_v12 = vpop.f32.mrf.mxu0 }
 0x134   :  { %v1109_v51 = vadd.f32 %v1108_v12, %v1107_v38 }
 0x136   :  { %v801_v37 = vadd.f32 %v1109_v51, %v633_v49 }
 0x13a   :  { %v1142_v7 = vpop.f32.mrf.mxu1 }
 0x13c   :  { %v1143_v50 = vpop.f32.mrf.mxu1 }
 0x13d   :  { %v1144_v2 = vadd.f32 %v1143_v50, %v1142_v7 }
 0x13f   :  { %v905_v56 = vadd.f32 %v1144_v2, %v801_v37 }
 0x141   :  { %v914_v27 = vcombine.high %v905_v56, %v905_v56  ;;  %917 = vst.msk [vmem:[#allocation2 + $0x2] sm:$0xf] %vm916_vm1, %v905_v56 }
 0x143   :  { %918 = vst.msk [vmem:[#allocation2 + $0xa] sm:$0xf] %vm916_vm1, %v914_v27 }
 0x144   :  { %1160 = shalt.err (!%p1157_p4)
}
 0x145   :  { %s1173_s22 = smov 128   ;;  %s1174_s23 = smov 8  }
 0x146   :  { %930 = dma.vmem_to_hbm [thread:$0]  %s925_s20, 256, %s1903_s2, [#allocation3], %s1173_s22, %s1173_s22, %s1174_s23  }
 0x147   :  { %1169 = dma.done.wait [#allocation3], 256  }
 0x148   :  { %1170 = vsyncadd [#allocation3], 4294967040 }
 0x149   :  { %934 = vsyncpa [#allocation3], 1 }

</bundles_post_ra>
